<compile_context>
chip_gen: v6e
topology: v6e:2x2x1
jax: 0.10.0
libtpu: 0.0.40
codegen_flags: <defaults>
</compile_context>

<pallas_src>
import functools

import jax
import jax.numpy as jnp
import numpy as np
from jax.experimental import pallas as pl
from jax.experimental.pallas import tpu as pltpu

LANE = 128
BIG = 1e30


def _round_up(x, m):
    return (x + m - 1) // m * m


# ----------------------------------------------------------------------------
# Generation-aware VMEM sizing
# ----------------------------------------------------------------------------
@functools.lru_cache(maxsize=None)
def _vmem_capacity_bytes():
    try:
        return int(pltpu.get_tpu_info().vmem_capacity_bytes)
    except Exception:
        return 128 * 1024 * 1024          # v5e / v6e default


@functools.lru_cache(maxsize=None)
def _vmem_limit_bytes():
    cap = _vmem_capacity_bytes()
    if cap <= 80 * 1024 * 1024:           # v7x-class: 64 MiB per TensorCore
        return 40 * 1024 * 1024
    return 96 * 1024 * 1024               # v5e / v6e: 128 MiB


def _k3_budget_bytes():
    return _vmem_limit_bytes() - 8 * 1024 * 1024   # headroom for compiler scratch


def _compiler(sem):
    return pltpu.CompilerParams(dimension_semantics=sem,
                                vmem_limit_bytes=_vmem_limit_bytes())


def _row_tile(n, cap=1024):
    """Power-of-two row tile: smallest pow2 >= n, capped (rows are padded to it)."""
    t = 8
    while t < n and t < cap:
        t *= 2
    return min(t, cap)


def _query_tile_cap(m, c_pad, c_x, budget_bytes, single_buffered):
    """Largest power-of-two K3 query tile whose VMEM working set fits the budget.

    Accounts for the double-buffered streamed blocks (pos/x in, out) and, if
    single-buffering of the grid-invariant inputs is unavailable, for their
    duplication by the default double-buffering."""
    inv_mult = 1 if single_buffered else 2
    invariants = inv_mult * (4 * 8 * m            # pos_sub^T (f32)
                             + 2 * m * c_pad      # feat_sub (bf16)
                             + 4 * c_x * c_pad    # mlp weight (f32)
                             + 5 * 4 * c_pad)     # bias/gamma/beta/mean/istd rows
    cap = 1024
    while cap > 8:
        streamed = 2 * 4 * cap * (8 + c_x + c_pad)       # double-buffered in + out
        temps = 4 * cap * (6 * m + 3 * c_pad + c_x)      # (tn,M) working set + mlp temps
        if invariants + streamed + temps <= budget_bytes:
            return cap
        cap //= 2
    return 8


# ----------------------------------------------------------------------------
# Single-buffering capability probe (pipeline_mode=pl.Buffered(1) on invariants)
# ----------------------------------------------------------------------------
_SINGLE_BUFFER_OK = None


def _probe_kernel(x_ref, o_ref):
    o_ref[...] = x_ref[...]


def _single_buffering_supported():
    global _SINGLE_BUFFER_OK
    if _SINGLE_BUFFER_OK is None:
        try:
            probe = pl.pallas_call(
                _probe_kernel,
                out_shape=jax.ShapeDtypeStruct((8, 128), jnp.float32),
                grid=(2,),
                in_specs=[pl.BlockSpec((8, 128), lambda i: (0, 0),
                                       pipeline_mode=pl.Buffered(1))],
                out_specs=pl.BlockSpec((8, 128), lambda i: (0, 0)),
                compiler_params=_compiler(("arbitrary",)),
            )
            jax.block_until_ready(probe(jnp.zeros((8, 128), jnp.float32)))
            _SINGLE_BUFFER_OK = True
        except Exception:
            _SINGLE_BUFFER_OK = False
    return _SINGLE_BUFFER_OK


def _invariant(shape):
    """BlockSpec for a grid-invariant (fully resident) input; single-buffered when possible."""
    ndim = len(shape)
    idx = lambda *_: (0,) * ndim
    if _single_buffering_supported():
        return pl.BlockSpec(shape, idx, pipeline_mode=pl.Buffered(1))
    return pl.BlockSpec(shape, idx)


# ----------------------------------------------------------------------------
# Kernel 1: Linear -> global BatchNorm statistics (one-pass sum / sumsq, split-reduced)
# ----------------------------------------------------------------------------
def _linear_bn_stats_kernel(x_ref, w_ref, b_ref, sum_ref, sq_ref, *,
                            n_valid, n_total, tiles_per_split):
    s = pl.program_id(0)
    i = pl.program_id(1)
    tm = x_ref.shape[0]
    z = jnp.dot(x_ref[...], w_ref[...], preferred_element_type=jnp.float32)
    z = z + b_ref[...]
    if n_valid != n_total:                       # static check: mask zero-padded rows
        start = (s * tiles_per_split + i) * tm
        rows = jax.lax.broadcasted_iota(jnp.int32, (tm, 1), 0) + start
        z = jnp.where(rows < n_valid, z, 0.0)

    @pl.when(i == 0)
    def _():
        sum_ref[...] = jnp.zeros_like(sum_ref)
        sq_ref[...] = jnp.zeros_like(sq_ref)

    # one pass: accumulate sum and sum-of-squares (f32), replicated over 8 sublanes
    sum_ref[...] += jnp.sum(z, axis=0, keepdims=True)[None]
    sq_ref[...] += jnp.sum(z * z, axis=0, keepdims=True)[None]


def linear_bn_stats(x_padded, w_pad, b_pad, *, n_valid, tile):
    """Training-mode BatchNorm statistics of Linear(x_padded[:n_valid]) -> (mean, inv-std)."""
    n_total, c_in = x_padded.shape
    c_pad = w_pad.shape[1]
    n_tiles = n_total // tile
    num_splits = 2 if (n_tiles >= 2 and n_tiles % 2 == 0) else 1
    tiles_per_split = n_tiles // num_splits

    sums, sqs = pl.pallas_call(
        functools.partial(_linear_bn_stats_kernel, n_valid=n_valid,
                          n_total=n_total, tiles_per_split=tiles_per_split),
        out_shape=(jax.ShapeDtypeStruct((num_splits, 8, c_pad), jnp.float32),
                   jax.ShapeDtypeStruct((num_splits, 8, c_pad), jnp.float32)),
        grid=(num_splits, tiles_per_split),
        in_specs=[pl.BlockSpec((tile, c_in),
                               lambda s, i: (s * tiles_per_split + i, 0)),
                  _invariant((c_in, c_pad)),
                  _invariant((1, c_pad))],
        out_specs=(pl.BlockSpec((1, 8, c_pad), lambda s, i: (s, 0, 0)),
                   pl.BlockSpec((1, 8, c_pad), lambda s, i: (s, 0, 0))),
        compiler_params=_compiler(("parallel", "arbitrary")),
    )(x_padded, w_pad, b_pad)

    # trivial combine + finalize (tiny arrays)
    total = jnp.sum(sums[:, 0, :], axis=0, keepdims=True)      # (1, c_pad)
    total_sq = jnp.sum(sqs[:, 0, :], axis=0, keepdims=True)
    mean = total / n_valid
    # NOTE: one-pass E[z^2]-E[z]^2 in f32; the max() guards cancellation-induced negatives.
    var = jnp.maximum(total_sq / n_valid - mean * mean, 0.0)
    istd = jax.lax.rsqrt(var + 1e-5)
    return mean, istd


# ----------------------------------------------------------------------------
# Kernel 2: Linear + BatchNorm apply (precomputed stats) + ReLU, tiled over points
# ----------------------------------------------------------------------------
def _linear_bn_apply_kernel(x_ref, w_ref, b_ref, g_ref, beta_ref,
                            mean_ref, istd_ref, o_ref):
    z = jnp.dot(x_ref[...], w_ref[...], preferred_element_type=jnp.float32)
    z = z + b_ref[...]
    zn = (z - mean_ref[...]) * istd_ref[...]
    o_ref[...] = jnp.maximum(zn * g_ref[...] + beta_ref[...], 0.0).astype(o_ref.dtype)


def linear_bn_relu_apply(x_padded, w_pad, b_pad, g_pad, beta_pad, mean, istd,
                         *, tile, out_dtype=jnp.bfloat16):
    n, c_in = x_padded.shape
    c_pad = w_pad.shape[1]
    return pl.pallas_call(
        _linear_bn_apply_kernel,
        out_shape=jax.ShapeDtypeStruct((n, c_pad), out_dtype),
        grid=(n // tile,),
        in_specs=[pl.BlockSpec((tile, c_in), lambda i: (i, 0)),
                  _invariant((c_in, c_pad)),
                  _invariant((1, c_pad)),
                  _invariant((1, c_pad)),
                  _invariant((1, c_pad)),
                  _invariant((1, c_pad)),
                  _invariant((1, c_pad))],
        out_specs=pl.BlockSpec((tile, c_pad), lambda i: (i, 0)),
        compiler_params=_compiler(("parallel",)),
    )(x_padded, w_pad, b_pad, g_pad, beta_pad, mean, istd)


# ----------------------------------------------------------------------------
# Kernel 3: fused mlp(x) apply + knn_interpolate(k=3) + residual add
# ----------------------------------------------------------------------------
def _knn_mlp_add_kernel(pos_ref, pos_sub_t_ref, feat_ref,
                        x_ref, w_ref, b_ref, g_ref, beta_ref,
                        mean_ref, istd_ref, o_ref):
    # --- mlp(x) tile: Linear + BN (precomputed global stats) + ReLU (f32) ----
    z = jnp.dot(x_ref[...], w_ref[...], preferred_element_type=jnp.float32)
    z = z + b_ref[...]
    zn = (z - mean_ref[...]) * istd_ref[...]
    mlp_x = jnp.maximum(zn * g_ref[...] + beta_ref[...], 0.0)

    # --- squared distances on the MXU: |a|^2 + |b|^2 - 2 a.b -----------------
    # batch ids are folded into lane/row 3 of the position slabs; mask them out
    # of the geometric part with a constant iota mask.
    p_all = pos_ref[...]                                          # (tn, 8)
    s_all = pos_sub_t_ref[...]                                    # (8, m)
    xyz_q = (jax.lax.broadcasted_iota(jnp.int32, (1, 8), 1) < 3).astype(jnp.float32)
    xyz_s = (jax.lax.broadcasted_iota(jnp.int32, (8, 1), 0) < 3).astype(jnp.float32)
    p = p_all * xyz_q
    ps = s_all * xyz_s
    cross = jnp.dot(p, ps, preferred_element_type=jnp.float32)    # (tn, m)
    q2 = jnp.sum(p * p, axis=1, keepdims=True)                    # (tn, 1)
    s2 = jnp.sum(ps * ps, axis=0, keepdims=True)                  # (1, m)
    d2 = jnp.maximum(q2 + s2 - 2.0 * cross, 0.0)                  # clamp cancellation

    same_batch = p_all[:, 3:4] == s_all[3:4, :]                   # (tn, m)
    work = jnp.where(same_batch, d2, BIG)

    # --- lean iterative top-3, inverse-squared-distance weights --------------
    # NOTE: exact duplicate distances are all selected in one round (tie handling
    # differs slightly from top_k; only matters for exactly duplicated points).
    w = None
    for t in range(3):
        dmin = jnp.min(work, axis=1, keepdims=True)               # (tn, 1)
        hit = work == dmin                                        # (tn, m)
        wk = jnp.where(dmin < BIG, 1.0 / jnp.maximum(dmin, 1e-16), 0.0)
        contrib = jnp.where(hit, wk, 0.0)                         # 0 for other-batch cols
        w = contrib if w is None else w + contrib
        if t < 2:
            work = jnp.where(hit, BIG, work)

    # --- interpolation: one bf16 MXU matmul (f32 acc), EUP reciprocal --------
    num = jnp.dot(w.astype(feat_ref.dtype), feat_ref[...],
                  preferred_element_type=jnp.float32)             # (tn, c_pad)
    den = jnp.maximum(jnp.sum(w, axis=1, keepdims=True), 1e-30)   # guard den == 0
    interp = num * pl.reciprocal(den, approx=True)
    o_ref[...] = (mlp_x + interp).astype(o_ref.dtype)


def knn_interp_mlp_add(pos_q, pos_sub_t, feat_sub, x_padded,
                       w_pad, b_pad, g_pad, beta_pad, mean, istd, *, tn):
    n = pos_q.shape[0]
    m, c_pad = feat_sub.shape
    c_x = x_padded.shape[1]
    return pl.pallas_call(
        _knn_mlp_add_kernel,
        out_shape=jax.ShapeDtypeStruct((n, c_pad), jnp.float32),
        grid=(n // tn,),
        in_specs=[
            pl.BlockSpec((tn, 8), lambda i: (i, 0)),    # query pos (xyz + batch lane)
            _invariant((8, m)),                         # sub pos^T (xyz + batch row)
            _invariant((m, c_pad)),                     # bf16 mlp_sub(x_sub) features
            pl.BlockSpec((tn, c_x), lambda i: (i, 0)),  # x tile (fused mlp(x))
            _invariant((c_x, c_pad)),                   # mlp weight
            _invariant((1, c_pad)),                     # bias
            _invariant((1, c_pad)),                     # gamma
            _invariant((1, c_pad)),                     # beta
            _invariant((1, c_pad)),                     # BN mean
            _invariant((1, c_pad)),                     # BN inv-std
        ],
        out_specs=pl.BlockSpec((tn, c_pad), lambda i: (i, 0)),
        compiler_params=_compiler(("parallel",)),
    )(pos_q, pos_sub_t, feat_sub, x_padded,
      w_pad, b_pad, g_pad, beta_pad, mean, istd)


# ----------------------------------------------------------------------------
# TransitionUp module (deterministic parameter init, torch Linear-style)
# ----------------------------------------------------------------------------
def _pad_cols(a, c_pad):
    return jnp.pad(a, ((0, 0), (0, c_pad - a.shape[1])))


def _pad_rows(a, n_pad):
    return jnp.pad(a, ((0, n_pad - a.shape[0]),) + ((0, 0),) * (a.ndim - 1))


def _fold_pos_batch(pos, batch, n_pad):
    """(n_pad, 8) slab: cols 0-2 xyz, col 3 batch id; pad rows get sentinel batch -1."""
    n = pos.shape[0]
    out = jnp.zeros((n_pad, 8), jnp.float32)
    out = out.at[:, 3].set(-1.0)
    out = out.at[:n, :3].set(pos.astype(jnp.float32))
    out = out.at[:n, 3].set(batch.astype(jnp.float32))
    return out


class TransitionUpPallas:
    def __init__(self, in_channels, out_channels, key):
        self.out_channels = out_channels
        k1, k2, k3, k4 = jax.random.split(key, 4)
        lim1 = 1.0 / np.sqrt(in_channels)
        self.w_sub = jax.random.uniform(k1, (in_channels, out_channels),
                                        jnp.float32, -lim1, lim1)
        self.b_sub = jax.random.uniform(k2, (out_channels,), jnp.float32, -lim1, lim1)
        lim2 = 1.0 / np.sqrt(out_channels)
        self.w = jax.random.uniform(k3, (out_channels, out_channels),
                                    jnp.float32, -lim2, lim2)
        self.b = jax.random.uniform(k4, (out_channels,), jnp.float32, -lim2, lim2)
        # BatchNorm1d affine params (torch default init)
        self.gamma_sub = jnp.ones((out_channels,), jnp.float32)
        self.beta_sub = jnp.zeros((out_channels,), jnp.float32)
        self.gamma = jnp.ones((out_channels,), jnp.float32)
        self.beta = jnp.zeros((out_channels,), jnp.float32)

    def __call__(self, x, x_sub, pos, pos_sub, batch, batch_sub):
        c = self.out_channels
        c_pad = _round_up(c, LANE)
        n, m = x.shape[0], x_sub.shape[0]
        c_x = x.shape[1]

        # lane-dense parameter padding (out-channels -> multiple of 128)
        row = lambda v: _pad_cols(v.reshape(1, -1), c_pad)
        w_sub_p, b_sub_p = _pad_cols(self.w_sub, c_pad), row(self.b_sub)
        g_sub_p, be_sub_p = row(self.gamma_sub), row(self.beta_sub)
        w_p, b_p = _pad_cols(self.w, c_pad), row(self.b)
        g_p, be_p = row(self.gamma), row(self.beta)

        # ---- mlp_sub(x_sub): stats pass + apply pass (rows padded to the tile) ----
        tm_sub = _row_tile(m)
        m_pad = _round_up(m, tm_sub)
        x_sub_p = _pad_rows(x_sub, m_pad)
        mean_s, istd_s = linear_bn_stats(x_sub_p, w_sub_p, b_sub_p,
                                         n_valid=m, tile=tm_sub)
        feat_sub = linear_bn_relu_apply(x_sub_p, w_sub_p, b_sub_p, g_sub_p, be_sub_p,
                                        mean_s, istd_s, tile=tm_sub)   # (m_pad, c_pad) bf16

        # ---- query tiling: VMEM-budgeted, rows padded to the chosen tile ----------
        tn = _row_tile(n, cap=_query_tile_cap(m_pad, c_pad, c_x, _k3_budget_bytes(),
                                              _single_buffering_supported()))
        tm_x = _row_tile(n)
        n_pad = _round_up(n, max(tn, tm_x))        # multiple of both (powers of two)
        x_p = _pad_rows(x, n_pad)

        # ---- mlp(x): stats pass only; the apply is fused into the knn kernel ------
        mean_x, istd_x = linear_bn_stats(x_p, w_p, b_p, n_valid=n, tile=tm_x)

        # ---- fused mlp(x) + knn_interpolate(k=3) + residual add -------------------
        pos_q = _fold_pos_batch(pos, batch, n_pad)                  # (n_pad, 8)
        pos_s_t = _fold_pos_batch(pos_sub, batch_sub, m_pad).T      # (8, m_pad)
        out_pad = knn_interp_mlp_add(pos_q, pos_s_t, feat_sub, x_p,
                                     w_p, b_p, g_p, be_p, mean_x, istd_x, tn=tn)
        return out_pad[:n, :c]


# ----------------------------------------------------------------------------
# Pure-JAX reference (different algorithm: top_k + gather) for validation
# ----------------------------------------------------------------------------
def reference(mod, x, x_sub, pos, pos_sub, batch, batch_sub):
    def mlp(z, w, b, g, be):
        z = z @ w + b
        mu = z.mean(0, keepdims=True)
        var = ((z - mu) ** 2).mean(0, keepdims=True)
        z = (z - mu) / jnp.sqrt(var + 1e-5) * g + be
        return jnp.maximum(z, 0.0)

    xs = mlp(x_sub, mod.w_sub, mod.b_sub, mod.gamma_sub, mod.beta_sub)
    xm = mlp(x, mod.w, mod.b, mod.gamma, mod.beta)
    d2 = ((pos[:, None, :] - pos_sub[None, :, :]) ** 2).sum(-1)
    d2 = jnp.where(batch[:, None] == batch_sub[None, :], d2, jnp.inf)
    negd, idx = jax.lax.top_k(-d2, 3)
    w = 1.0 / jnp.clip(-negd, 1e-16, None)
    interp = (w[..., None] * xs[idx]).sum(1) / w.sum(1, keepdims=True)
    return xm + interp


if __name__ == "__main__":
    key = jax.random.PRNGKey(0)
    k_mod, k_x, k_xs, k_p, k_ps = jax.random.split(key, 5)

    N, M = 64, 32                 # query points / sub-sampled points
    IN_C, OUT_C = 16, 32          # in_channels, out_channels

    x = jax.random.normal(k_x, (N, OUT_C), jnp.float32)        # x already at out_channels
    x_sub = jax.random.normal(k_xs, (M, IN_C), jnp.float32)
    pos = jax.random.uniform(k_p, (N, 3), jnp.float32)
    pos_sub = jax.random.uniform(k_ps, (M, 3), jnp.float32)
    batch = jnp.repeat(jnp.arange(2, dtype=jnp.int32), N // 2)        # 2 graphs
    batch_sub = jnp.repeat(jnp.arange(2, dtype=jnp.int32), M // 2)

    module = TransitionUpPallas(IN_C, OUT_C, k_mod)

    out = jax.block_until_ready(module(x, x_sub, pos, pos_sub, batch, batch_sub))

    ref = reference(module, x, x_sub, pos, pos_sub, batch, batch_sub)
    # bf16 feature / interpolation-matmul path -> slightly relaxed tolerance
    np.testing.assert_allclose(np.asarray(out), np.asarray(ref), rtol=2e-2, atol=2e-2)

    print("KERNEL_OK")
</pallas_src>

<mosaic_0001>
module attributes {stable_mosaic.version = 11 : i64} {
  func.func @_probe_kernel(%arg0: i32, %arg1: memref<8x128xf32, #tpu.memory_space<vmem>>, %arg2: memref<8x128xf32, #tpu.memory_space<vmem>>) attributes {dimension_semantics = [#tpu.dimension_semantics<arbitrary>], iteration_bounds = array<i64: 2>, scalar_prefetch = 0 : i64, scratch_operands = 0 : i64, tpu.core_type = #tpu.core_type<tc>, window_params = [{pipeline_mode = #tpu.pipeline_mode<synchronous>, transform_indices = @transform_0, window_bounds = array<i64: 8, 128>}, {pipeline_mode = #tpu.pipeline_mode<synchronous>, transform_indices = @transform_1, window_bounds = array<i64: 8, 128>}]} {
    %c0 = arith.constant 0 : index
    %c0_0 = arith.constant 0 : index
    %0 = vector.load %arg1[%c0, %c0_0] : memref<8x128xf32, #tpu.memory_space<vmem>>, vector<8x128xf32>
    %c0_1 = arith.constant 0 : index
    %c0_2 = arith.constant 0 : index
    %1 = vector.load %arg2[%c0_1, %c0_2] : memref<8x128xf32, #tpu.memory_space<vmem>>, vector<8x128xf32>
    tpu.vector_store %arg2[%c0_1, %c0_2], %0 {strides = array<i32>} : memref<8x128xf32, #tpu.memory_space<vmem>>, vector<8x128xf32>,
    return
  }
  func.func @transform_0(%arg0: i32) -> (i32, i32) {
    %c0_i32 = arith.constant 0 : i32
    %c0_i32_0 = arith.constant 0 : i32
    %c0_i32_1 = arith.constant 0 : i32
    return %c0_i32, %c0_i32_0 : i32, i32
  }
  func.func @transform_1(%arg0: i32) -> (i32, i32) {
    %c0_i32 = arith.constant 0 : i32
    %c0_i32_0 = arith.constant 0 : i32
    %c0_i32_1 = arith.constant 0 : i32
    return %c0_i32, %c0_i32_0 : i32, i32
  }
}

module attributes {stable_mosaic.version = 11 : i64} {
  func.func @_linear_bn_stats_kernel(%arg0: i32, %arg1: i32, %arg2: memref<32x16xf32, #tpu.memory_space<vmem>>, %arg3: memref<16x128xf32, #tpu.memory_space<vmem>>, %arg4: memref<1x128xf32, #tpu.memory_space<vmem>>, %arg5: memref<1x8x128xf32, #tpu.memory_space<vmem>>, %arg6: memref<1x8x128xf32, #tpu.memory_space<vmem>>) attributes {dimension_semantics = [#tpu.dimension_semantics<parallel>, #tpu.dimension_semantics<arbitrary>], iteration_bounds = array<i64: 1, 1>, scalar_prefetch = 0 : i64, scratch_operands = 0 : i64, tpu.core_type = #tpu.core_type<tc>, window_params = [{transform_indices = @transform_0, window_bounds = array<i64: 32, 16>}, {pipeline_mode = #tpu.pipeline_mode<synchronous>, transform_indices = @transform_1, window_bounds = array<i64: 16, 128>}, {pipeline_mode = #tpu.pipeline_mode<synchronous>, transform_indices = @transform_2, window_bounds = array<i64: 1, 128>}, {transform_indices = @transform_3, window_bounds = array<i64: 1, 8, 128>}, {transform_indices = @transform_4, window_bounds = array<i64: 1, 8, 128>}]} {
    %c0 = arith.constant 0 : index
    %c0_0 = arith.constant 0 : index
    %0 = vector.load %arg2[%c0, %c0_0] : memref<32x16xf32, #tpu.memory_space<vmem>>, vector<32x16xf32>
    %c0_1 = arith.constant 0 : index
    %c0_2 = arith.constant 0 : index
    %1 = vector.load %arg3[%c0_1, %c0_2] : memref<16x128xf32, #tpu.memory_space<vmem>>, vector<16x128xf32>
    %cst = arith.constant dense<0.000000e+00> : vector<32x128xf32>
    %2 = tpu.matmul %0, %1, %cst {dimension_numbers = #tpu.dot_dimension_numbers<[1], [0], [0], [1], [0, 0, 1, 1], [], []>} : vector<32x16xf32>, vector<16x128xf32>, vector<32x128xf32> -> vector<32x128xf32>
    %c0_3 = arith.constant 0 : index
    %c0_4 = arith.constant 0 : index
    %3 = vector.load %arg4[%c0_3, %c0_4] : memref<1x128xf32, #tpu.memory_space<vmem>>, vector<1x128xf32>
    %4 = vector.broadcast %3 : vector<1x128xf32> to vector<32x128xf32>
    %5 = arith.addf %2, %4 : vector<32x128xf32>
    %c0_i32 = arith.constant 0 : i32
    %6 = arith.cmpi eq, %arg1, %c0_i32 : i32
    %7 = arith.extui %6 : i1 to i32
    %c0_i32_5 = arith.constant 0 : i32
    %8 = arith.cmpi ne, %7, %c0_i32_5 : i32
    scf.if %8 {
      %cst_20 = arith.constant 0.000000e+00 : f32
      %24 = vector.broadcast %cst_20 : f32 to vector<1x8x128xf32>
      %c0_21 = arith.constant 0 : index
      %c0_22 = arith.constant 0 : index
      %c0_23 = arith.constant 0 : index
      %25 = vector.load %arg5[%c0_21, %c0_22, %c0_23] : memref<1x8x128xf32, #tpu.memory_space<vmem>>, vector<1x8x128xf32>
      tpu.vector_store %arg5[%c0_21, %c0_22, %c0_23], %24 {strides = array<i32>} : memref<1x8x128xf32, #tpu.memory_space<vmem>>, vector<1x8x128xf32>,
      %cst_24 = arith.constant 0.000000e+00 : f32
      %26 = vector.broadcast %cst_24 : f32 to vector<1x8x128xf32>
      %c0_25 = arith.constant 0 : index
      %c0_26 = arith.constant 0 : index
      %c0_27 = arith.constant 0 : index
      %27 = vector.load %arg6[%c0_25, %c0_26, %c0_27] : memref<1x8x128xf32, #tpu.memory_space<vmem>>, vector<1x8x128xf32>
      tpu.vector_store %arg6[%c0_25, %c0_26, %c0_27], %26 {strides = array<i32>} : memref<1x8x128xf32, #tpu.memory_space<vmem>>, vector<1x8x128xf32>,
    } else {
    }
    %c0_6 = arith.constant 0 : index
    %c0_7 = arith.constant 0 : index
    %c0_8 = arith.constant 0 : index
    %9 = vector.load %arg5[%c0_6, %c0_7, %c0_8] : memref<1x8x128xf32, #tpu.memory_space<vmem>>, vector<1x8x128xf32>
    %cst_9 = arith.constant dense<0.000000e+00> : vector<128xf32>
    %10 = vector.multi_reduction <add>, %5, %cst_9 [0] : vector<32x128xf32> to vector<128xf32>
    %11 = vector.shape_cast %10 : vector<128xf32> to vector<1x128xf32>
    %12 = vector.shape_cast %11 : vector<1x128xf32> to vector<1x1x128xf32>
    %13 = vector.broadcast %12 : vector<1x1x128xf32> to vector<1x8x128xf32>
    %14 = arith.addf %9, %13 : vector<1x8x128xf32>
    %c0_10 = arith.constant 0 : index
    %c0_11 = arith.constant 0 : index
    %c0_12 = arith.constant 0 : index
    %15 = vector.load %arg5[%c0_10, %c0_11, %c0_12] : memref<1x8x128xf32, #tpu.memory_space<vmem>>, vector<1x8x128xf32>
    tpu.vector_store %arg5[%c0_10, %c0_11, %c0_12], %14 {strides = array<i32>} : memref<1x8x128xf32, #tpu.memory_space<vmem>>, vector<1x8x128xf32>,
    %c0_13 = arith.constant 0 : index
    %c0_14 = arith.constant 0 : index
    %c0_15 = arith.constant 0 : index
    %16 = vector.load %arg6[%c0_13, %c0_14, %c0_15] : memref<1x8x128xf32, #tpu.memory_space<vmem>>, vector<1x8x128xf32>
    %17 = arith.mulf %5, %5 : vector<32x128xf32>
    %cst_16 = arith.constant dense<0.000000e+00> : vector<128xf32>
    %18 = vector.multi_reduction <add>, %17, %cst_16 [0] : vector<32x128xf32> to vector<128xf32>
    %19 = vector.shape_cast %18 : vector<128xf32> to vector<1x128xf32>
    %20 = vector.shape_cast %19 : vector<1x128xf32> to vector<1x1x128xf32>
    %21 = vector.broadcast %20 : vector<1x1x128xf32> to vector<1x8x128xf32>
    %22 = arith.addf %16, %21 : vector<1x8x128xf32>
    %c0_17 = arith.constant 0 : index
    %c0_18 = arith.constant 0 : index
    %c0_19 = arith.constant 0 : index
    %23 = vector.load %arg6[%c0_17, %c0_18, %c0_19] : memref<1x8x128xf32, #tpu.memory_space<vmem>>, vector<1x8x128xf32>
    tpu.vector_store %arg6[%c0_17, %c0_18, %c0_19], %22 {strides = array<i32>} : memref<1x8x128xf32, #tpu.memory_space<vmem>>, vector<1x8x128xf32>,
    return
  }
  func.func @transform_0(%arg0: i32, %arg1: i32) -> (i32, i32) {
    %c1_i32 = arith.constant 1 : i32
    %0 = arith.muli %arg0, %c1_i32 : i32
    %1 = arith.addi %0, %arg1 : i32
    %c0_i32 = arith.constant 0 : i32
    %c0_i32_0 = arith.constant 0 : i32
    return %1, %c0_i32 : i32, i32
  }
  func.func @transform_1(%arg0: i32, %arg1: i32) -> (i32, i32) {
    %c0_i32 = arith.constant 0 : i32
    %c0_i32_0 = arith.constant 0 : i32
    %c0_i32_1 = arith.constant 0 : i32
    return %c0_i32, %c0_i32_0 : i32, i32
  }
  func.func @transform_2(%arg0: i32, %arg1: i32) -> (i32, i32) {
    %c0_i32 = arith.constant 0 : i32
    %c0_i32_0 = arith.constant 0 : i32
    %c0_i32_1 = arith.constant 0 : i32
    return %c0_i32, %c0_i32_0 : i32, i32
  }
  func.func @transform_3(%arg0: i32, %arg1: i32) -> (i32, i32, i32) {
    %c0_i32 = arith.constant 0 : i32
    %c0_i32_0 = arith.constant 0 : i32
    %c0_i32_1 = arith.constant 0 : i32
    return %arg0, %c0_i32, %c0_i32_0 : i32, i32, i32
  }
  func.func @transform_4(%arg0: i32, %arg1: i32) -> (i32, i32, i32) {
    %c0_i32 = arith.constant 0 : i32
    %c0_i32_0 = arith.constant 0 : i32
    %c0_i32_1 = arith.constant 0 : i32
    return %arg0, %c0_i32, %c0_i32_0 : i32, i32, i32
  }
}

</mosaic_0001>

<bundles_post_ra>
// kernel: tpu_custom_call.1
= control target key start
LH: loop header
LB: loop body
LE: loop exit
PB: predicated region body
PF: predicated region fallthrough
CT: control target
= control target key end

     0   :  { %6 = vsyncpa [#allocation3], 0  ;;  %s304_s0 = inlined_call_operand.hbm [shape: f32[8,128], index: 0, kind: input, shape index: {}]   ;;  %s305_s1 = inlined_call_operand.hbm [shape: f32[8,128], index: 1, kind: output, shape index: {}]  }
   0x1   :  { %7 = vsyncpa [#allocation4], 0  ;;  %s257_s6 = smov 0  }
   0x2 LB: > { %s144_s7 = sadd.s32 4294967295, %s243_s6   ;;  %p145_p0 = scmp.ge.s32.totalorder %s243_s6, 1  ;;  %s243_s6 = sphi %s257_s6, %s13_s6  }
   0x3   : > { %p60_p1 = scmp.lt.s32.totalorder %s243_s6, 3  ;;  %p269_p3 = scmp.eq.s32.totalorder %s144_s7, 0 }
   0x4   : > { %s245_s10 = smov [#allocation2]  }
   0x5   : > { %p265_p2 = pnand %p145_p0, %p60_p1  ;;  %s73_s11 = sshll.u32 %s245_s10, 4  ;;  %s74_s11 = int_to_ptr.vmem [resolvable:$true] %s73_s11 }
   0x6   : > { %s190_s12 = scalar_lea.vmem %s74_s11, 128  ;;  %p198_p10 = scmp.lt.s32.totalorder %s74_s11, %s74_s11 }
   0x7   : > { %p161_p4 = pneg %p265_p2  ;;  %p191_p7 = scmp.ne.s32.totalorder %s74_s11, %s190_s12 }
   0x8   : > { %p199_p11 = scmp.lt.s32.totalorder %s190_s12, %s190_s12 }
   0x9   : > { %p162_p5 = pnand %p269_p3, %p161_p4 }
   0xa   : > { %p200_p12 = por %p199_p11, %p198_p10 }
   0xb   : > { %p181_p6 = pneg %p162_p5 }
   0xd   : > { %p193_p8 = pnand %p191_p7, %p181_p6 }
   0xf   : > { %p194_p9 = pneg %p193_p8 }
  0x11   : > { %p201_p13 = pnand %p200_p12, %p194_p9 }
  0x13   : > { %204 = shalt.err (!%p201_p13)
}
  0x14   : > { %164 = dma.hbm_to_vmem [thread:$0]  (!%p162_p5), %s304_s0, 128, %s74_s11, [#allocation3]  }
  0x15   : > { %86 = sbr.rel (%p265_p2) target bundleno = 42 (0x2a), region = 24 }
  0x1a   : > { %234 = dma.done.wait (%p269_p3), [#allocation3], 128  }
  0x1b   : > { %236 = vsyncadd (%p269_p3), [#allocation3], 4294967168  ;;  %s246_s15 = smov [#allocation5]   ;;  %p286_p0 = scmp.eq.s32.totalorder %s144_s7, 1  ;;  %v96_v0 = vld [vmem:[#allocation2] sm:$0xff] }
  0x1c   : > { %s105_s16 = sshll.u32 %s246_s15, 4  ;;  %97 = vst [vmem:[#allocation5] sm:$0xff] %v96_v0  ;;  %s106_s16 = int_to_ptr.vmem [resolvable:$true] %s105_s16 }
  0x1d   : > { %s205_s18 = scalar_lea.vmem %s106_s16, 128  ;;  %p212_p5 = scmp.lt.s32.totalorder %s106_s16, %s106_s16 }
  0x1e   : > { %p206_p1 = scmp.ne.s32.totalorder %s106_s16, %s205_s18  ;;  %p213_p6 = scmp.lt.s32.totalorder %s205_s18, %s205_s18 }
  0x20   : > { %p207_p2 = pnand %p206_p1, %p286_p0  ;;  %p214_p7 = por %p213_p6, %p212_p5 }
  0x22   : > { %p208_p4 = pneg %p207_p2 }
  0x24   : > { %p215_p8 = pnand %p214_p7, %p208_p4 }
  0x26   : > { %218 = shalt.err (!%p215_p8)
}
  0x27   : > { %158 = dma.vmem_to_hbm [thread:$0]  (%p286_p0), %s106_s16, 128, %s305_s1, [#allocation4]  }
  0x28   : > { %238 = dma.done.wait (%p286_p0), [#allocation4], 128  }
  0x29   : > { %240 = vsyncadd (%p286_p0), [#allocation4], 4294967168 }
  0x2a PF: > { %s13_s6 = sadd.s32 1, %s243_s6  }
  0x2b   : > { %p10_p3 = scmp.ge.s32.totalorder %s13_s6, 4  }
  0x2d   :  { %12 = sbr.rel (!%p10_p3) target bundleno = 2 (0x2), region = 53 }
  0x32   :  { %118 = vsyncpa [#allocation3], 1 }
  0x33   :  { %120 = vsyncpa [#allocation3 + $0x1], 1 }
  0x34   :  { %121 = vsyncpa [#allocation4], 1 }
  0x35   :  { %123 = vsyncpa [#allocation4 + $0x1], 1 }

// kernel: tpu_custom_call.1
= control target key start
LH: loop header
LB: loop body
LE: loop exit
PB: predicated region body
PF: predicated region fallthrough
CT: control target
= control target key end

     0   :  { %10 = vsyncpa [#allocation3], 0  ;;  %vm53_vm0 = vcmask 130048   ;;  %s345_s0 = inlined_call_operand.vmem [shape: f32[32,16], index: 0, kind: input, shape index: {}]   ;;  %s346_s1 = inlined_call_operand.vmem [shape: f32[16,128], index: 1, kind: input, shape index: {}]   ;;  %s347_s2 = inlined_call_operand.vmem [shape: f32[1,128], index: 2, kind: input, shape index: {}]   ;;  %s348_s3 = inlined_call_operand.hbm [shape: f32[1,8,128], index: 3, kind: output, shape index: {0}]   ;;  %s349_s4 = inlined_call_operand.hbm [shape: f32[1,8,128], index: 4, kind: output, shape index: {1}]  }
   0x1   :  { %v45_v0 = vld [vmem:[%s346_s1 + $0x8] sm:$0xff]  ;;  %v44_v1 = vld [vmem:[%s346_s1] sm:$0xff]  ;;  %v42_v3 = vld [vmem:[%s345_s0 + $0x10] sm:$0xff] }
   0x2   :  { %230 = vmatprep.subr.mxu0 %v45_v0  ;;  %240 = vmatprep.subr.mxu1 %v45_v0  ;;  %v40_v2 = vld [vmem:[%s345_s0] sm:$0xff] }
   0x3   :  { %231 = vmatpush3.msra.mxu0 %v45_v0  ;;  %242 = vmatpush3.msra.mxu1 %v45_v0 }
   0x4   :  { %11 = vsyncpa [#allocation5], 0  ;;  %232 = vmatprep.subr.mxu0 %v44_v1  ;;  %241 = vmatprep.subr.mxu1 %v44_v1  ;;  %v41_v4 = vld [vmem:[%s345_s0 + $0x8] sm:$0xff]  ;;  %v43_v5 = vld [vmem:[%s345_s0 + $0x18] sm:$0xff]  ;;  %s291_s0 = smov [#allocation2]   ;;  %s292_s28 = smov [#allocation4]  }
   0x5   :  { %233 = vmatpush3.msra.mxu0 %v44_v1  ;;  %243 = vmatpush3.msra.mxu1 %v44_v1  ;;  %v219_v6 = vld [vmem:[%s347_s2] ss:$0 sm:$0xff]  ;;  %s191_s2 = sshll.u32 %s291_s0, 4  ;;  %s201_s29 = sshll.u32 %s292_s28, 4  ;;  %s192_s2 = int_to_ptr.vmem [resolvable:$true] %s191_s2  ;;  %s202_s29 = int_to_ptr.vmem [resolvable:$true] %s201_s29 }
   0x6   :  { %234 = vmatprep.mubr.msk.f32.mxu0 %vm53_vm0, %v40_v2  ;;  %237 = vmatprep.mubr.msk.f32.mxu1 %vm53_vm0, %v42_v3  ;;  %s247_s30 = scalar_lea.vmem %s192_s2, 128  ;;  %p252_p1 = scmp.lt.s32.totalorder %s192_s2, %s192_s2 }
   0x7   :  { %235 = vmatmul.mubr.msk.f32.vlgmr.msra.gmra.mxu0 %vm53_vm0, %v41_v4  ;;  %238 = vmatmul.mubr.msk.f32.vlgmr.msra.gmra.mxu1 %vm53_vm0, %v43_v5  ;;  %p248_p0 = scmp.ne.s32.totalorder %s192_s2, %s247_s30  ;;  %p253_p2 = scmp.lt.s32.totalorder %s247_s30, %s247_s30 }
   0x9   :  { %p254_p3 = por %p253_p2, %p252_p1 }
   0xb   :  { %p255_p4 = pnand %p254_p3, %p248_p0 }
  0xc7   :  { %v236_v7 = vpop.f32.mrf.mxu0  ;;  %v239_v8 = vpop.f32.mrf.mxu1 }
  0xc8   :  { %v138_v9 = vadd.f32 %v236_v7, %v219_v6  ;;  %v148_v15 = vadd.f32 %v239_v8, %v219_v6 }
  0xc9   :  { %v132_v10 = vpop.f32.mrf.mxu0  ;;  %v142_v11 = vpop.f32.mrf.mxu1 }
  0xca   :  { %v133_v12 = vadd.f32 %v219_v6, %v132_v10  ;;  %v143_v13 = vadd.f32 %v219_v6, %v142_v11  ;;  %v171_v14 = vmul.f32 %v138_v9, %v138_v9  ;;  %v173_v21 = vmul.f32 %v148_v15, %v148_v15 }
  0xcc   :  { %v158_v16 = vadd.f32 %v138_v9, %v133_v12  ;;  %v170_v17 = vmul.f32 %v133_v12, %v133_v12  ;;  %v172_v20 = vmul.f32 %v143_v13, %v143_v13 }
  0xce   :  { %v174_v18 = vadd.f32 %v171_v14, %v170_v17  ;;  %v159_v19 = vadd.f32 %v158_v16, %v143_v13 }
  0xd0   :  { %v160_v22 = vadd.f32 %v159_v19, %v148_v15  ;;  %v175_v23 = vadd.f32 %v174_v18, %v172_v20 }
  0xd2   :  { %v161_v24 = vrot.slane %v160_v22, 4  ;;  %v176_v25 = vadd.f32 %v175_v23, %v173_v21 }
  0xd4   :  { %v162_v26 = vadd.f32 %v161_v24, %v160_v22  ;;  %v177_v27 = vrot.slane %v176_v25, 4 }
  0xd6   :  { %v163_v28 = vrot.slane %v162_v26, 2  ;;  %v178_v29 = vadd.f32 %v177_v27, %v176_v25 }
  0xd8   :  { %v179_v30 = vrot.slane %v178_v29, 2  ;;  %v164_v31 = vadd.f32 %v163_v28, %v162_v26 }
  0xda   :  { %v165_v32 = vrot.slane %v164_v31, 1  ;;  %v180_v33 = vadd.f32 %v179_v30, %v178_v29 }
  0xdc   :  { %v166_v34 = vadd.f32 %v165_v32, %v164_v31  ;;  %v181_v35 = vrot.slane %v180_v33, 1 }
  0xde   :  { %v182_v36 = vadd.f32 %v181_v35, %v180_v33  ;;  %168 = vst [vmem:[#allocation2] sm:$0xff] %v166_v34 }
  0xdf   :  { %258 = shalt.err (!%p255_p4)
}
  0xe0   :  { %194 = dma.vmem_to_hbm [thread:$0]  %s192_s2, 128, %s348_s3, [#allocation3]   ;;  %184 = vst [vmem:[#allocation4] sm:$0xff] %v182_v36 }
  0xe1   :  { %s267_s7 = scalar_lea.vmem %s202_s29, 128  ;;  %p272_p6 = scmp.lt.s32.totalorder %s202_s29, %s202_s29 }
  0xe2   :  { %p268_p5 = scmp.ne.s32.totalorder %s202_s29, %s267_s7  ;;  %p273_p7 = scmp.lt.s32.totalorder %s267_s7, %s267_s7 }
  0xe4   :  { %p274_p8 = por %p273_p7, %p272_p6 }
  0xe6   :  { %p275_p9 = pnand %p274_p8, %p268_p5 }
  0xe8   :  { %278 = shalt.err (!%p275_p9)
}
  0xe9   :  { %204 = dma.vmem_to_hbm [thread:$0]  %s202_s29, 128, %s349_s4, [#allocation5]  }
  0xea   :  { %287 = dma.done.wait [#allocation3], 128  }
  0xeb   :  { %288 = vsyncadd [#allocation3], 4294967168 }
  0xec   :  { %289 = dma.done.wait [#allocation5], 128  }
  0xed   :  { %290 = vsyncadd [#allocation5], 4294967168 }
  0xee   :  { %211 = vsyncpa [#allocation3], 1 }
  0xef   :  { %212 = vsyncpa [#allocation5], 1 }

</bundles_post_ra>
